<compile_context>
chip_gen: v7x
topology: tpu7x:2x2x1
jax: 0.10.0
libtpu: 0.0.40
codegen_flags: <defaults>
</compile_context>

<pallas_src>
import functools

import jax
import jax.numpy as jnp
from jax import lax
from jax.experimental import pallas as pl
from jax.experimental.pallas import tpu as pltpu


def _dpc_kernel(*refs, H, W, is_relu, sel_first):
    """Fused depthwise-3x3 + BN1 + pointwise-1x1 + BN2 (+ReLU) on one batch block.

    refs:
      x_ref   : (1, nb*C, H*W)        sublane-packed input slab
      dwf_ref : (nb*C, 9)             depthwise weights * BN1 scale (row-tiled)
      pw_ref  : (nb*Cout, nb*C)       block-diag pointwise weights * BN2 scale
      b_ref   : (nb*Cout, 1)          folded bias (BN1 shift through pw + BN2 shift)
      sel_ref : (H*W, HWo_pad)        only when stride>1: 0/1 subsample matrix
      o_ref   : (1, nb*Cout, HWo_pad) output slab (lane-dense last dim)
    """
    if len(refs) == 6:
        x_ref, dwf_ref, pw_ref, b_ref, sel_ref, o_ref = refs
    else:
        x_ref, dwf_ref, pw_ref, b_ref, o_ref = refs
        sel_ref = None

    HW = H * W
    x = x_ref[0].astype(jnp.float32)            # (R, HW)  R = nb*C
    dwf = dwf_ref[...].astype(jnp.float32)      # (R, 9)
    pw = pw_ref[...].astype(jnp.float32)        # (Ro, R)  Ro = nb*Cout
    bias = b_ref[...].astype(jnp.float32)       # (Ro, 1)

    # ---- edge masks built in-kernel from iota (no mask input streams) ----
    idx = lax.broadcasted_iota(jnp.int32, (1, HW), 1)
    if (W & (W - 1)) == 0:                      # power-of-two width fast path
        col = idx & (W - 1)
    else:
        col = idx % W
    ml = (col != 0).astype(jnp.float32)           # dx = -1 taps valid
    mr = (col != W - 1).astype(jnp.float32)       # dx = +1 taps valid
    rt = (idx >= W).astype(jnp.float32)           # dy = -1 taps valid (row != 0)
    rb = (idx < (H - 1) * W).astype(jnp.float32)  # dy = +1 taps valid (row != H-1)

    # ---- depthwise 3x3 (padding=1) via XLU lane rotations, no staging copy ----
    # x_dy[q] = x[(q + dy*W) mod HW] with the vertical wrap killed; each tap is
    # then roll(x_dy, -dx); the horizontal (column) wrap is killed once per dx
    # group.  Weight broadcasts happen exactly once per grid step.
    x_dy = {
        -1: pltpu.roll(x, W, axis=1) * rt,        # shift = -(-1)*W = +W
        0: x,
        1: pltpu.roll(x, HW - W, axis=1) * rb,    # shift = -W (mod HW)
    }
    acc = None
    for dx, cmask in ((-1, ml), (0, None), (1, mr)):
        part = None
        for dy in (-1, 0, 1):
            t = (dy + 1) * 3 + (dx + 1)           # tap index into the 3x3 kernel
            if dx == 0:
                xs = x_dy[dy]
            else:
                xs = pltpu.roll(x_dy[dy], (-dx) % HW, axis=1)
            term = xs * dwf[:, t:t + 1]
            part = term if part is None else part + term
        if cmask is not None:
            part = part * cmask
        acc = part if acc is None else acc + part  # (R, HW): BN1-scaled depthwise

    # ---- pointwise 1x1 (block-diagonal over the batch block) on the MXU ----
    if sel_ref is not None:
        sel = sel_ref[...].astype(jnp.float32)     # (HW, HWo_pad) 0/1 subsample
        if sel_first:
            y = jnp.dot(acc, sel, preferred_element_type=jnp.float32)
            z = jnp.dot(pw, y, preferred_element_type=jnp.float32)
        else:
            z = jnp.dot(jnp.dot(pw, acc, preferred_element_type=jnp.float32),
                        sel, preferred_element_type=jnp.float32)
    else:
        z = jnp.dot(pw, acc, preferred_element_type=jnp.float32)

    z = z + bias                                   # folded BN1/BN2 shifts
    if is_relu:
        z = jnp.maximum(z, 0.0)
    o_ref[0] = z.astype(o_ref.dtype)               # lane-dense store (last dim % 128 == 0)


def depth_point_conv(x, dw_oihw, pw_oihw, bn1, bn2, *, stride=1, is_relu=True,
                     eps=1e-5, nb=None):
    """NCHW in -> NCHW out, like the PyTorch module (eval-mode BN).

    x       : (N, C, H, W)
    dw_oihw : (C, 1, 3, 3)     depthwise conv weight
    pw_oihw : (Cout, C, 1, 1)  pointwise conv weight
    bn1/bn2 : (gamma, beta, running_mean, running_var)
    """
    N, C, H, W = x.shape
    Cout = pw_oihw.shape[0]
    Ho = (H + 2 - 3) // stride + 1
    Wo = (W + 2 - 3) // stride + 1
    HW, HWo = H * W, Ho * Wo

    # ---- batch block size: pack nb*C rows onto the 8-row sublane axis ----
    if nb is None:
        divisors = [d for d in range(1, N + 1) if N % d == 0]
        packed = [d for d in divisors if (d * C) % 8 == 0]
        nb = max(packed) if packed else max(divisors)
        # TODO(synk): on v7x cap nb at N//2 so the "parallel" grid axis has >=2
        #             steps for the two TensorCores; v5e/v6e prefer max nb.
    assert N % nb == 0, "batch block size must divide N"
    R, Ro = nb * C, nb * Cout

    # ---- fold BN constants into the conv weights and a single output bias ----
    # (valid because there is no ReLU between BN1 and the pointwise conv)
    g1, be1, m1, v1 = bn1
    g2, be2, m2, v2 = bn2
    s1 = g1 * lax.rsqrt(v1 + eps)
    sh1 = be1 - m1 * s1
    s2 = g2 * lax.rsqrt(v2 + eps)
    sh2 = be2 - m2 * s2

    pw = pw_oihw[:, :, 0, 0].astype(jnp.float32)                          # (Cout, C)
    dwf = dw_oihw[:, 0].reshape(C, 9).astype(jnp.float32) * s1[:, None]   # (C, 9)
    pw2 = pw * s2[:, None]                                                # (Cout, C)
    bias = (sh2 + s2 * (pw @ sh1)).astype(jnp.float32)                    # (Cout,)

    # Sublane-tiled parameter slabs for the packed batch block.
    dwf_slab = jnp.tile(dwf, (nb, 1))                                     # (R, 9)
    pw_blk = jnp.kron(jnp.eye(nb, dtype=jnp.float32), pw2)                # (Ro, R)
    bias_slab = jnp.tile(bias.reshape(Cout, 1), (nb, 1))                  # (Ro, 1)

    # NCHW kept end-to-end; this is a free metadata reshape.
    x_slab = x.reshape(N // nb, R, HW)

    # Lane-dense output layout: pad HWo up to a multiple of 128 (via zero sel
    # columns) so the per-step store is never a masked partial store.
    if stride > 1:
        HWo_pad = ((HWo + 127) // 128) * 128
        rows = jnp.arange(Ho) * stride
        cols = jnp.arange(Wo) * stride
        src = (rows[:, None] * W + cols[None, :]).reshape(-1)             # (HWo,)
        sel = jnp.zeros((HW, HWo_pad), jnp.float32)
        sel = sel.at[src, jnp.arange(HWo)].set(1.0)
        # Pick the matmul order by FLOPs (review: avoid the low-utilization order).
        cost_sel_first = R * HW * HWo_pad + Ro * R * HWo_pad
        cost_pw_first = Ro * R * HW + Ro * HW * HWo_pad
        sel_first = cost_sel_first <= cost_pw_first
    else:
        HWo_pad = HW      # TODO(synk): pad HW too if it is not a multiple of 128
        sel = None
        sel_first = False

    inputs = [x_slab, dwf_slab, pw_blk, bias_slab]
    in_specs = [
        pl.BlockSpec((1, R, HW), lambda n: (n, 0, 0)),
        pl.BlockSpec((R, 9), lambda n: (0, 0)),
        pl.BlockSpec((Ro, R), lambda n: (0, 0)),
        pl.BlockSpec((Ro, 1), lambda n: (0, 0)),
    ]
    if sel is not None:
        inputs.append(sel)
        in_specs.append(pl.BlockSpec((HW, HWo_pad), lambda n: (0, 0)))

    kernel = functools.partial(_dpc_kernel, H=H, W=W, is_relu=is_relu,
                               sel_first=sel_first)

    # Exact per-step block footprint (double-buffered by the pipeline); capped
    # at physical VMEM for v5e/v6e-class parts.
    blk_bytes = 4 * (R * HW + Ro * HWo_pad + R * 9 + Ro * R + Ro
                     + (HW * HWo_pad if sel is not None else 0))
    vmem_limit = int(min(128 * 2 ** 20, max(4 * 2 ** 20, 3 * blk_bytes)))

    out = pl.pallas_call(
        kernel,
        out_shape=jax.ShapeDtypeStruct((N // nb, Ro, HWo_pad), x.dtype),
        grid_spec=pltpu.PrefetchScalarGridSpec(
            num_scalar_prefetch=0,
            grid=(N // nb,),
            in_specs=in_specs,
            out_specs=pl.BlockSpec((1, Ro, HWo_pad), lambda n: (n, 0, 0)),
        ),
        compiler_params=pltpu.CompilerParams(
            dimension_semantics=("parallel",),
            vmem_limit_bytes=vmem_limit),
    )(*inputs)

    # Undo the lane-dense layout in the wrapper (free reshape + tiny slice).
    out = out.reshape(N, Cout, HWo_pad)[:, :, :HWo]
    return out.reshape(N, Cout, Ho, Wo)


def _reference(x, dw_oihw, pw_oihw, bn1, bn2, *, stride, is_relu, eps=1e-5):
    """Pure-JAX reference of the same forward pass (unfused BN)."""
    C = x.shape[1]
    g1, be1, m1, v1 = bn1
    g2, be2, m2, v2 = bn2
    y = lax.conv_general_dilated(
        x, dw_oihw, (stride, stride), ((1, 1), (1, 1)),
        feature_group_count=C, dimension_numbers=("NCHW", "OIHW", "NCHW"))
    y = (y - m1[None, :, None, None]) * lax.rsqrt(v1 + eps)[None, :, None, None] \
        * g1[None, :, None, None] + be1[None, :, None, None]
    z = lax.conv_general_dilated(
        y, pw_oihw, (1, 1), ((0, 0), (0, 0)),
        dimension_numbers=("NCHW", "OIHW", "NCHW"))
    z = (z - m2[None, :, None, None]) * lax.rsqrt(v2 + eps)[None, :, None, None] \
        * g2[None, :, None, None] + be2[None, :, None, None]
    return jnp.maximum(z, 0.0) if is_relu else z


if __name__ == "__main__":
    N, C, H, W = 2, 4, 16, 16
    Cout = 8
    eps = 1e-5

    key = jax.random.PRNGKey(0)
    ks = jax.random.split(key, 11)
    x = jax.random.normal(ks[0], (N, C, H, W), jnp.float32)
    dw_oihw = jax.random.normal(ks[1], (C, 1, 3, 3), jnp.float32) * 0.3
    pw_oihw = jax.random.normal(ks[2], (Cout, C, 1, 1), jnp.float32) * 0.3
    bn1 = (1.0 + 0.1 * jax.random.normal(ks[3], (C,), jnp.float32),
           0.1 * jax.random.normal(ks[4], (C,), jnp.float32),
           0.1 * jax.random.normal(ks[5], (C,), jnp.float32),
           jnp.abs(jax.random.normal(ks[6], (C,), jnp.float32)) + 0.5)
    bn2 = (1.0 + 0.1 * jax.random.normal(ks[7], (Cout,), jnp.float32),
           0.1 * jax.random.normal(ks[8], (Cout,), jnp.float32),
           0.1 * jax.random.normal(ks[9], (Cout,), jnp.float32),
           jnp.abs(jax.random.normal(ks[10], (Cout,), jnp.float32)) + 0.5)

    configs = [
        dict(stride=1, is_relu=True, nb=None),   # packed slab (nb*C = 8), grid of 1
        dict(stride=1, is_relu=False, nb=1),     # 2 grid steps (v7x-style), no ReLU
        dict(stride=2, is_relu=True, nb=None),   # strided path, lane-padded output
    ]
    for cfg in configs:
        out = jax.block_until_ready(
            depth_point_conv(x, dw_oihw, pw_oihw, bn1, bn2, eps=eps, **cfg))
        ref = jax.block_until_ready(
            _reference(x, dw_oihw, pw_oihw, bn1, bn2, eps=eps,
                       stride=cfg["stride"], is_relu=cfg["is_relu"]))
        assert out.shape == ref.shape, (cfg, out.shape, ref.shape)
        err = float(jnp.max(jnp.abs(out - ref)))
        assert jnp.allclose(out, ref, rtol=1e-4, atol=1e-4), (cfg, err)

    print("KERNEL_OK")
</pallas_src>

<mosaic_0001>
module attributes {stable_mosaic.version = 11 : i64} {
  func.func @_dpc_kernel(%arg0: i32, %arg1: memref<1x8x256xf32, #tpu.memory_space<vmem>>, %arg2: memref<8x9xf32, #tpu.memory_space<vmem>>, %arg3: memref<16x8xf32, #tpu.memory_space<vmem>>, %arg4: memref<16x1xf32, #tpu.memory_space<vmem>>, %arg5: memref<1x16x256xf32, #tpu.memory_space<vmem>>) attributes {dimension_semantics = [#tpu.dimension_semantics<parallel>], iteration_bounds = array<i64: 1>, scalar_prefetch = 0 : i64, scratch_operands = 0 : i64, tpu.core_type = #tpu.core_type<tc>, window_params = [{transform_indices = @transform_0, window_bounds = array<i64: 1, 8, 256>}, {pipeline_mode = #tpu.pipeline_mode<synchronous>, transform_indices = @transform_1, window_bounds = array<i64: 8, 9>}, {pipeline_mode = #tpu.pipeline_mode<synchronous>, transform_indices = @transform_2, window_bounds = array<i64: 16, 8>}, {pipeline_mode = #tpu.pipeline_mode<synchronous>, transform_indices = @transform_3, window_bounds = array<i64: 16, 1>}, {transform_indices = @transform_4, window_bounds = array<i64: 1, 16, 256>}]} {
    %c0 = arith.constant 0 : index
    %c0_0 = arith.constant 0 : index
    %c0_1 = arith.constant 0 : index
    %0 = vector.load %arg1[%c0, %c0_0, %c0_1] : memref<1x8x256xf32, #tpu.memory_space<vmem>>, vector<1x8x256xf32>
    %1 = vector.shape_cast %0 : vector<1x8x256xf32> to vector<8x256xf32>
    %c0_2 = arith.constant 0 : index
    %c0_3 = arith.constant 0 : index
    %2 = vector.load %arg2[%c0_2, %c0_3] : memref<8x9xf32, #tpu.memory_space<vmem>>, vector<8x9xf32>
    %c0_4 = arith.constant 0 : index
    %c0_5 = arith.constant 0 : index
    %3 = vector.load %arg3[%c0_4, %c0_5] : memref<16x8xf32, #tpu.memory_space<vmem>>, vector<16x8xf32>
    %c0_6 = arith.constant 0 : index
    %c0_7 = arith.constant 0 : index
    %4 = vector.load %arg4[%c0_6, %c0_7] : memref<16x1xf32, #tpu.memory_space<vmem>>, vector<16x1xf32>
    %5 = tpu.iota {dimensions = array<i32: 1>} : vector<1x256xi32>
    %c15_i32 = arith.constant 15 : i32
    %6 = vector.broadcast %c15_i32 : i32 to vector<1x256xi32>
    %7 = arith.andi %5, %6 : vector<1x256xi32>
    %c0_i32 = arith.constant 0 : i32
    %8 = vector.broadcast %c0_i32 : i32 to vector<1x256xi32>
    %9 = arith.cmpi ne, %7, %8 : vector<1x256xi32>
    %10 = arith.extui %9 : vector<1x256xi1> to vector<1x256xi32>
    %11 = arith.sitofp %10 : vector<1x256xi32> to vector<1x256xf32>
    %c15_i32_8 = arith.constant 15 : i32
    %12 = vector.broadcast %c15_i32_8 : i32 to vector<1x256xi32>
    %13 = arith.cmpi ne, %7, %12 : vector<1x256xi32>
    %14 = arith.extui %13 : vector<1x256xi1> to vector<1x256xi32>
    %15 = arith.sitofp %14 : vector<1x256xi32> to vector<1x256xf32>
    %c16_i32 = arith.constant 16 : i32
    %16 = vector.broadcast %c16_i32 : i32 to vector<1x256xi32>
    %17 = arith.cmpi sge, %5, %16 : vector<1x256xi32>
    %18 = arith.extui %17 : vector<1x256xi1> to vector<1x256xi32>
    %19 = arith.sitofp %18 : vector<1x256xi32> to vector<1x256xf32>
    %c240_i32 = arith.constant 240 : i32
    %20 = vector.broadcast %c240_i32 : i32 to vector<1x256xi32>
    %21 = arith.cmpi slt, %5, %20 : vector<1x256xi32>
    %22 = arith.extui %21 : vector<1x256xi1> to vector<1x256xi32>
    %23 = arith.sitofp %22 : vector<1x256xi32> to vector<1x256xf32>
    %c16_i32_9 = arith.constant 16 : i32
    %24 = tpu.dynamic_rotate %1 by %c16_i32_9 dim 1 : vector<8x256xf32>, i32 -> vector<8x256xf32>
    %25 = vector.broadcast %19 : vector<1x256xf32> to vector<8x256xf32>
    %26 = arith.mulf %24, %25 : vector<8x256xf32>
    %c240_i32_10 = arith.constant 240 : i32
    %27 = tpu.dynamic_rotate %1 by %c240_i32_10 dim 1 : vector<8x256xf32>, i32 -> vector<8x256xf32>
    %28 = vector.broadcast %23 : vector<1x256xf32> to vector<8x256xf32>
    %29 = arith.mulf %27, %28 : vector<8x256xf32>
    %c1_i32 = arith.constant 1 : i32
    %30 = tpu.dynamic_rotate %26 by %c1_i32 dim 1 : vector<8x256xf32>, i32 -> vector<8x256xf32>
    %31 = vector.extract_strided_slice %2 {offsets = [0, 0], sizes = [8, 1], strides = [1, 1]} : vector<8x9xf32> to vector<8x1xf32>
    %32 = vector.broadcast %31 : vector<8x1xf32> to vector<8x256xf32>
    %33 = arith.mulf %30, %32 : vector<8x256xf32>
    %c1_i32_11 = arith.constant 1 : i32
    %34 = tpu.dynamic_rotate %1 by %c1_i32_11 dim 1 : vector<8x256xf32>, i32 -> vector<8x256xf32>
    %35 = vector.extract_strided_slice %2 {offsets = [0, 3], sizes = [8, 1], strides = [1, 1]} : vector<8x9xf32> to vector<8x1xf32>
    %36 = vector.broadcast %35 : vector<8x1xf32> to vector<8x256xf32>
    %37 = arith.mulf %34, %36 : vector<8x256xf32>
    %38 = arith.addf %33, %37 : vector<8x256xf32>
    %c1_i32_12 = arith.constant 1 : i32
    %39 = tpu.dynamic_rotate %29 by %c1_i32_12 dim 1 : vector<8x256xf32>, i32 -> vector<8x256xf32>
    %40 = vector.extract_strided_slice %2 {offsets = [0, 6], sizes = [8, 1], strides = [1, 1]} : vector<8x9xf32> to vector<8x1xf32>
    %41 = vector.broadcast %40 : vector<8x1xf32> to vector<8x256xf32>
    %42 = arith.mulf %39, %41 : vector<8x256xf32>
    %43 = arith.addf %38, %42 : vector<8x256xf32>
    %44 = vector.broadcast %11 : vector<1x256xf32> to vector<8x256xf32>
    %45 = arith.mulf %43, %44 : vector<8x256xf32>
    %46 = vector.extract_strided_slice %2 {offsets = [0, 1], sizes = [8, 1], strides = [1, 1]} : vector<8x9xf32> to vector<8x1xf32>
    %47 = vector.broadcast %46 : vector<8x1xf32> to vector<8x256xf32>
    %48 = arith.mulf %26, %47 : vector<8x256xf32>
    %49 = vector.extract_strided_slice %2 {offsets = [0, 4], sizes = [8, 1], strides = [1, 1]} : vector<8x9xf32> to vector<8x1xf32>
    %50 = vector.broadcast %49 : vector<8x1xf32> to vector<8x256xf32>
    %51 = arith.mulf %1, %50 : vector<8x256xf32>
    %52 = arith.addf %48, %51 : vector<8x256xf32>
    %53 = vector.extract_strided_slice %2 {offsets = [0, 7], sizes = [8, 1], strides = [1, 1]} : vector<8x9xf32> to vector<8x1xf32>
    %54 = vector.broadcast %53 : vector<8x1xf32> to vector<8x256xf32>
    %55 = arith.mulf %29, %54 : vector<8x256xf32>
    %56 = arith.addf %52, %55 : vector<8x256xf32>
    %57 = arith.addf %45, %56 : vector<8x256xf32>
    %c255_i32 = arith.constant 255 : i32
    %58 = tpu.dynamic_rotate %26 by %c255_i32 dim 1 : vector<8x256xf32>, i32 -> vector<8x256xf32>
    %59 = vector.extract_strided_slice %2 {offsets = [0, 2], sizes = [8, 1], strides = [1, 1]} : vector<8x9xf32> to vector<8x1xf32>
    %60 = vector.broadcast %59 : vector<8x1xf32> to vector<8x256xf32>
    %61 = arith.mulf %58, %60 : vector<8x256xf32>
    %c255_i32_13 = arith.constant 255 : i32
    %62 = tpu.dynamic_rotate %1 by %c255_i32_13 dim 1 : vector<8x256xf32>, i32 -> vector<8x256xf32>
    %63 = vector.extract_strided_slice %2 {offsets = [0, 5], sizes = [8, 1], strides = [1, 1]} : vector<8x9xf32> to vector<8x1xf32>
    %64 = vector.broadcast %63 : vector<8x1xf32> to vector<8x256xf32>
    %65 = arith.mulf %62, %64 : vector<8x256xf32>
    %66 = arith.addf %61, %65 : vector<8x256xf32>
    %c255_i32_14 = arith.constant 255 : i32
    %67 = tpu.dynamic_rotate %29 by %c255_i32_14 dim 1 : vector<8x256xf32>, i32 -> vector<8x256xf32>
    %68 = vector.extract_strided_slice %2 {offsets = [0, 8], sizes = [8, 1], strides = [1, 1]} : vector<8x9xf32> to vector<8x1xf32>
    %69 = vector.broadcast %68 : vector<8x1xf32> to vector<8x256xf32>
    %70 = arith.mulf %67, %69 : vector<8x256xf32>
    %71 = arith.addf %66, %70 : vector<8x256xf32>
    %72 = vector.broadcast %15 : vector<1x256xf32> to vector<8x256xf32>
    %73 = arith.mulf %71, %72 : vector<8x256xf32>
    %74 = arith.addf %57, %73 : vector<8x256xf32>
    %cst = arith.constant dense<0.000000e+00> : vector<16x256xf32>
    %75 = tpu.matmul %3, %74, %cst {dimension_numbers = #tpu.dot_dimension_numbers<[1], [0], [0], [1], [0, 0, 1, 1], [], []>} : vector<16x8xf32>, vector<8x256xf32>, vector<16x256xf32> -> vector<16x256xf32>
    %76 = vector.broadcast %4 : vector<16x1xf32> to vector<16x256xf32>
    %77 = arith.addf %75, %76 : vector<16x256xf32>
    %cst_15 = arith.constant 0.000000e+00 : f32
    %78 = vector.broadcast %cst_15 : f32 to vector<16x256xf32>
    %79 = arith.maximumf %77, %78 : vector<16x256xf32>
    %c0_16 = arith.constant 0 : index
    %c0_17 = arith.constant 0 : index
    %c0_18 = arith.constant 0 : index
    %80 = vector.load %arg5[%c0_16, %c0_17, %c0_18] : memref<1x16x256xf32, #tpu.memory_space<vmem>>, vector<1x16x256xf32>
    %81 = vector.shape_cast %80 : vector<1x16x256xf32> to vector<16x256xf32>
    %82 = vector.shape_cast %79 : vector<16x256xf32> to vector<1x16x256xf32>
    tpu.vector_store %arg5[%c0_16, %c0_17, %c0_18], %82 {strides = array<i32>} : memref<1x16x256xf32, #tpu.memory_space<vmem>>, vector<1x16x256xf32>,
    return
  }
  func.func @transform_0(%arg0: i32) -> (i32, i32, i32) {
    %c0_i32 = arith.constant 0 : i32
    %c0_i32_0 = arith.constant 0 : i32
    %c0_i32_1 = arith.constant 0 : i32
    return %arg0, %c0_i32, %c0_i32_0 : i32, i32, i32
  }
  func.func @transform_1(%arg0: i32) -> (i32, i32) {
    %c0_i32 = arith.constant 0 : i32
    %c0_i32_0 = arith.constant 0 : i32
    %c0_i32_1 = arith.constant 0 : i32
    return %c0_i32, %c0_i32_0 : i32, i32
  }
  func.func @transform_2(%arg0: i32) -> (i32, i32) {
    %c0_i32 = arith.constant 0 : i32
    %c0_i32_0 = arith.constant 0 : i32
    %c0_i32_1 = arith.constant 0 : i32
    return %c0_i32, %c0_i32_0 : i32, i32
  }
  func.func @transform_3(%arg0: i32) -> (i32, i32) {
    %c0_i32 = arith.constant 0 : i32
    %c0_i32_0 = arith.constant 0 : i32
    %c0_i32_1 = arith.constant 0 : i32
    return %c0_i32, %c0_i32_0 : i32, i32
  }
  func.func @transform_4(%arg0: i32) -> (i32, i32, i32) {
    %c0_i32 = arith.constant 0 : i32
    %c0_i32_0 = arith.constant 0 : i32
    %c0_i32_1 = arith.constant 0 : i32
    return %arg0, %c0_i32, %c0_i32_0 : i32, i32, i32
  }
}

</mosaic_0001>

<bundles_post_ra>
// kernel: tpu_custom_call.1
= control target key start
LH: loop header
LB: loop body
LE: loop exit
PB: predicated region body
PF: predicated region fallthrough
CT: control target
= control target key end

     0   :  { %s363_s17 = smov 112   ;;  %s364_s18 = smov 16   ;;  %v365_v2 = vmov 1   ;;  %v366_v3 = vmov 3   ;;  %s526_s0 = inlined_call_operand.vmem [shape: f32[1,8,256], index: 0, kind: input, shape index: {}]   ;;  %s527_s1 = inlined_call_operand.vmem [shape: f32[8,9], index: 1, kind: input, shape index: {}]   ;;  %s528_s2 = inlined_call_operand.vmem [shape: f32[16,8], index: 2, kind: input, shape index: {}]   ;;  %s529_s3 = inlined_call_operand.vmem [shape: f32[16,1], index: 3, kind: input, shape index: {}]   ;;  %s530_s4 = inlined_call_operand.hbm [shape: f32[1,16,256], index: 4, kind: output, shape index: {}]  }
   0x1   :  { %v407_v0 = vld [vmem:[%s526_s0] sm:$0xff]  ;;  %v415_v1 = vld [vmem:[%s526_s0 + $0x8] sm:$0xff]  ;;  %331 = vset.pattern.permute.xlu0 %v365_v2  ;;  %329 = vset.pattern.permute.xlu1 %v366_v3 }
   0x2   :  { %63 = vrot.lane.b32.xlu1 %v407_v0, %s363_s17  ;;  %54 = vrot.lane.b32.xlu0 %v407_v0, %s364_s18 }
   0x3   :  { %9 = vsyncpa [#allocation3], 0  ;;  %v367_v4 = vmov 0.0   ;;  %v20_v5 = vld [vmem:[%s527_s1] sm:$0xff]  ;;  %v368_v6 = vmov 6   ;;  %v369_v7 = vmov 5   ;;  %v25_v13 = vlaneseq }
   0x4   :  { %266 = vmatprep.mubr.f32.mxu0 %v367_v4  ;;  %272 = vmatprep.mubr.f32.mxu1 %v367_v4  ;;  %v370_v8 = vmov 4   ;;  %v371_v9 = vmov 0   ;;  %v372_v10 = vmov 2   ;;  %s373_s0 = smov 1   ;;  %s374_s1 = smov 127   ;;  %v375_v11 = vmov 7  }
   0x5   :  { %v376_v12 = vmov 8   ;;  %v433_v14 = vand.u32 127, %v25_v13  ;;  %v23_v28 = vld [vmem:[%s529_s3] sm:$0xff]  ;;  %v24_v30 = vld [vmem:[%s529_s3 + $0x8] sm:$0xff]  ;;  %vm195_vm10 = vcmask 64512   ;;  %s377_s30 = smov [#allocation2]  }
   0x6   :  { %65 = vrot.lane.b32.xlu1 %v415_v1, %s363_s17  ;;  %56 = vrot.lane.b32.xlu0 %v415_v1, %s364_s18  ;;  %s292_s5 = sshll.u32 %s377_s30, 4  ;;  %s293_s5 = int_to_ptr.vmem [resolvable:$true] %s292_s5 }
   0x7   :  { %v436_v17 = vadd.s32 128, %v433_v14  ;;  %vm67_vm0 = vcmp.lt.s32.totalorder %v433_v14, 112  ;;  %vm42_vm1 = vcmp.ge.s32.totalorder %v433_v14, 16  ;;  %vm58_vm2 = vcmp.lt.s32.totalorder %v433_v14, 16  ;;  %p344_p1 = scmp.lt.s32.totalorder %s293_s5, %s293_s5 }
   0x8   :  { %v307_v20 = vsel %vm42_vm1, 1.0, %v367_v4  ;;  %vm76_vm4 = vcmp.lt.s32.totalorder %v433_v14, 1  ;;  %v28_v58 = vand.u32 15, %v433_v14  ;;  %vm144_vm5 = vcmp.lt.s32.totalorder %v433_v14, 127  ;;  %v21_v14 = vld [vmem:[%s528_s2] sm:$0xff] }
   0x9   :  { %vm49_vm3 = vcmp.lt.s32.totalorder %v436_v17, 240  ;;  %v29_v57 = vand.u32 15, %v436_v17 }
   0xa   :  { %93 = vperm.xlu1 %329, %v20_v5   ;;  %117 = vperm.xlu0 %331, %v20_v5   ;;  %v308_v25 = vsel %vm49_vm3, 1.0, %v367_v4  ;;  %vm478_vm7 = vcmp.ne.s32.totalorder %v28_v58, 0  ;;  %vm36_vm9 = vcmp.ne.s32.totalorder %v28_v58, 15 }
   0xb   :  { %vm474_vm6 = vcmp.ne.s32.totalorder %v29_v57, 0  ;;  %vm37_vm8 = vcmp.ne.s32.totalorder %v29_v57, 15 }
   0xe   :  { %330 = vset.pattern.permute.xlu1 %v368_v6  ;;  %334 = vset.pattern.permute.xlu0 %v369_v7 }
   0xf   :  { %107 = vperm.xlu1 %330, %v20_v5   ;;  %160 = vperm.xlu0 %334, %v20_v5  }
  0x13   :  { %332 = vset.pattern.permute.xlu1 %v370_v8  ;;  %335 = vset.pattern.permute.xlu0 %v371_v9 }
  0x14   :  { %123 = vperm.xlu1 %332, %v20_v5   ;;  %81 = vperm.xlu0 %335, %v20_v5  }
  0x18   :  { %333 = vset.pattern.permute.xlu1 %v372_v10  ;;  %86 = vrot.lane.b32.xlu0 %v407_v0, %s373_s0 }
  0x19   :  { %148 = vperm.xlu1 %333, %v20_v5  }
  0x1c   :  { %153 = vrot.lane.b32.xlu0 %v407_v0, %s374_s1 }
  0x1d   :  { %336 = vset.pattern.permute.xlu1 %v375_v11 }
  0x1e   :  { %131 = vperm.xlu1 %336, %v20_v5  }
  0x22   :  { %337 = vset.pattern.permute.xlu1 %v376_v12 }
  0x23   :  { %174 = vperm.xlu1 %337, %v20_v5  }
  0x27   :  { %88 = vrot.lane.b32.xlu1 %v415_v1, %s373_s0 }
  0x28   :  { %338 = vset.pattern.permute.xlu1 %v371_v9 }
  0x2b   :  { %155 = vrot.lane.b32.xlu1 %v415_v1, %s374_s1 }
  0x74   :  { %v64_v15 = vpop.permute.xlu1 %63  ;;  %v55_v16 = vpop.permute.xlu0 %54 }
  0x78   :  { %v66_v18 = vpop.permute.xlu1 %65  ;;  %v57_v19 = vpop.permute.xlu0 %56 }
  0x79   :  { %v60_v21 = vsel %vm58_vm2, %v57_v19, %v55_v16  ;;  %v68_v22 = vsel %vm67_vm0, %v64_v15, %v66_v18  ;;  %v59_v23 = vsel %vm58_vm2, %v55_v16, %v57_v19  ;;  %v69_v26 = vsel %vm67_vm0, %v66_v18, %v64_v15 }
  0x7a   :  { %100 = vrot.lane.b32.xlu0 %v68_v22, %s373_s0  ;;  %74 = vrot.lane.b32.xlu1 %v59_v23, %s373_s0  ;;  %v61_v24 = vmul.f32 %v307_v20, %v60_v21  ;;  %v71_v27 = vmul.f32 %v308_v25, %v69_v26 }
  0x7e   :  { %72 = vrot.lane.b32.xlu0 %v61_v24, %s373_s0  ;;  %142 = vrot.lane.b32.xlu1 %v59_v23, %s374_s1 }
  0x82   :  { %140 = vrot.lane.b32.xlu0 %v61_v24, %s374_s1  ;;  %102 = vrot.lane.b32.xlu1 %v71_v27, %s373_s0 }
  0x86   :  { %167 = vrot.lane.b32.xlu0 %v68_v22, %s374_s1  ;;  %169 = vrot.lane.b32.xlu1 %v71_v27, %s374_s1 }
  0x89   :  { %v94_v29 = vpop.permute.xlu1 %93  ;;  %v118_v34 = vpop.permute.xlu0 %117 }
  0x8a   :  { %187 = vperm.xlu0 %335, %v23_v28   ;;  %192 = vperm.xlu1 %338, %v24_v30   ;;  %v120_v37 = vmul.f32 %v118_v34, %v61_v24  ;;  %v121_v38 = vmul.f32 %v118_v34, %v59_v23  ;;  %v304_v23 = vsel %vm474_vm6, 1.0, %v367_v4  ;;  %v303_v24 = vsel %vm478_vm7, 1.0, %v367_v4 }
  0x8e   :  { %v108_v31 = vpop.permute.xlu1 %107  ;;  %v161_v46 = vpop.permute.xlu0 %160 }
  0x93   :  { %v124_v32 = vpop.permute.xlu1 %123  ;;  %v82_v48 = vpop.permute.xlu0 %81 }
  0x94   :  { %v126_v35 = vmul.f32 %v124_v32, %v407_v0  ;;  %v127_v36 = vmul.f32 %v124_v32, %v415_v1 }
  0x96   :  { %v128_v40 = vadd.f32 %v126_v35, %v120_v37  ;;  %v129_v41 = vadd.f32 %v127_v36, %v121_v38  ;;  %v306_v37 = vsel %vm37_vm8, 1.0, %v367_v4  ;;  %v305_v38 = vsel %vm36_vm9, 1.0, %v367_v4 }
  0x97   :  { %v87_v50 = vpop.permute.xlu0 %86 }
  0x98   :  { %v149_v33 = vpop.permute.xlu1 %148 }
  0x9b   :  { %v154_v52 = vpop.permute.xlu0 %153 }
  0x9d   :  { %v132_v39 = vpop.permute.xlu1 %131 }
  0x9e   :  { %v134_v42 = vmul.f32 %v132_v39, %v68_v22  ;;  %v135_v43 = vmul.f32 %v132_v39, %v71_v27 }
  0xa0   :  { %v460_v44 = vadd.f32 %v134_v42, %v128_v40  ;;  %v137_v45 = vadd.f32 %v135_v43, %v129_v41 }
  0xa2   :  { %v175_v47 = vpop.permute.xlu1 %174 }
  0xa6   :  { %v89_v49 = vpop.permute.xlu1 %88 }
  0xa7   :  { %v90_v55 = vsel %vm76_vm4, %v87_v50, %v89_v49  ;;  %v91_v56 = vsel %vm76_vm4, %v89_v49, %v87_v50 }
  0xa8   :  { %v96_v63 = vmul.f32 %v94_v29, %v91_v56  ;;  %v97_v0 = vmul.f32 %v94_v29, %v90_v55 }
  0xaa   :  { %v156_v51 = vpop.permute.xlu1 %155 }
  0xab   :  { %v157_v6 = vsel %vm144_vm5, %v154_v52, %v156_v51  ;;  %v158_v7 = vsel %vm144_vm5, %v156_v51, %v154_v52 }
  0xac   :  { %v163_v21 = vmul.f32 %v161_v46, %v157_v6  ;;  %v164_v22 = vmul.f32 %v161_v46, %v158_v7 }
  0xec   :  { %v75_v53 = vpop.permute.xlu1 %74  ;;  %v101_v54 = vpop.permute.xlu0 %100 }
  0xf0   :  { %v143_v59 = vpop.permute.xlu1 %142  ;;  %v73_v60 = vpop.permute.xlu0 %72 }
  0xf1   :  { %v77_v61 = vsel %vm76_vm4, %v73_v60, %v75_v53  ;;  %v78_v62 = vsel %vm76_vm4, %v75_v53, %v73_v60 }
  0xf2   :  { %v84_v1 = vmul.f32 %v82_v48, %v78_v62  ;;  %v85_v2 = vmul.f32 %v82_v48, %v77_v61 }
  0xf4   :  { %v98_v8 = vadd.f32 %v96_v63, %v84_v1  ;;  %v99_v9 = vadd.f32 %v97_v0, %v85_v2  ;;  %v103_v10 = vpop.permute.xlu1 %102  ;;  %v141_v11 = vpop.permute.xlu0 %140 }
  0xf5   :  { %v104_v12 = vsel %vm76_vm4, %v101_v54, %v103_v10  ;;  %v105_v13 = vsel %vm76_vm4, %v103_v10, %v101_v54  ;;  %v145_v15 = vsel %vm144_vm5, %v141_v11, %v143_v59  ;;  %v146_v16 = vsel %vm144_vm5, %v143_v59, %v141_v11 }
  0xf6   :  { %v110_v17 = vmul.f32 %v108_v31, %v105_v13  ;;  %v111_v18 = vmul.f32 %v108_v31, %v104_v12  ;;  %v151_v19 = vmul.f32 %v149_v33, %v145_v15  ;;  %v152_v20 = vmul.f32 %v149_v33, %v146_v16 }
  0xf8   :  { %v112_v25 = vadd.f32 %v110_v17, %v98_v8  ;;  %v113_v26 = vadd.f32 %v111_v18, %v99_v9  ;;  %v170_v27 = vpop.permute.xlu1 %169  ;;  %v168_v28 = vpop.permute.xlu0 %167  ;;  %v165_v29 = vadd.f32 %v163_v21, %v151_v19  ;;  %v166_v30 = vadd.f32 %v164_v22, %v152_v20 }
  0xf9   :  { %v171_v31 = vsel %vm144_vm5, %v168_v28, %v170_v27  ;;  %v172_v32 = vsel %vm144_vm5, %v170_v27, %v168_v28 }
  0xfa   :  { %v177_v33 = vmul.f32 %v175_v47, %v171_v31  ;;  %v178_v34 = vmul.f32 %v175_v47, %v172_v32  ;;  %v115_v35 = vmul.f32 %v304_v23, %v113_v26  ;;  %v114_v36 = vmul.f32 %v303_v24, %v112_v25  ;;  %v22_v47 = vld [vmem:[%s528_s2 + $0x8] sm:$0xff]  ;;  %s339_s2 = scalar_lea.vmem %s293_s5, 512 }
  0xfb   :  { %p340_p0 = scmp.ne.s32.totalorder %s293_s5, %s339_s2  ;;  %p345_p2 = scmp.lt.s32.totalorder %s339_s2, %s339_s2 }
  0xfc   :  { %v179_v39 = vadd.f32 %v177_v33, %v165_v29  ;;  %v180_v40 = vadd.f32 %v178_v34, %v166_v30  ;;  %v139_v41 = vadd.f32 %v137_v45, %v115_v35  ;;  %v138_v43 = vadd.f32 %v460_v44, %v114_v36 }
  0xfd   :  { %p346_p3 = por %p345_p2, %p344_p1 }
  0xfe   :  { %v182_v42 = vmul.f32 %v306_v37, %v180_v40  ;;  %v181_v46 = vmul.f32 %v305_v38, %v179_v39 }
  0xff   :  { %p347_p4 = pnand %p346_p3, %p340_p0 }
 0x100   :  { %v184_v48 = vadd.f32 %v182_v42, %v139_v41  ;;  %v183_v49 = vadd.f32 %v181_v46, %v138_v43 }
 0x102   :  { %202 = vmatprep.subr.mxu0 %v184_v48  ;;  %311 = vmatprep.subr.mxu1 %v184_v48 }
 0x103   :  { %203 = vmatpush1.msra.mxu0 %v183_v49  ;;  %312 = vmatpush1.msra.mxu1 %v183_v49 }
 0x104   :  { %309 = vmatmul.mubr.msk.f32.vlgmr.msra.gmra.mrb[0].mxu0 %vm195_vm10, %v21_v14  ;;  %310 = vmatmul.mubr.msk.f32.vlgmr.msra.gmra.mrb[0].mxu1 %vm195_vm10, %v22_v47 }
 0x109   :  { %v193_v4 = vpop.permute.xlu1 %192  ;;  %v188_v44 = vpop.permute.xlu0 %187 }
 0x1d7   :  { %v268_v45 = vpop.f32.mrb[0].mxu0  ;;  %v274_v50 = vpop.f32.mrb[0].mxu1 }
 0x1d8   :  { %v269_v51 = vadd.f32 %v268_v45, %v188_v44  ;;  %v275_v52 = vadd.f32 %v274_v50, %v193_v4  ;;  %v270_v53 = vpop.f32.mrb[1].mxu0  ;;  %v276_v54 = vpop.f32.mrb[1].mxu1 }
 0x1d9   :  { %v271_v55 = vadd.f32 %v270_v53, %v188_v44  ;;  %v277_v56 = vadd.f32 %v276_v54, %v193_v4 }
 0x1da   :  { %v279_v57 = vmax.f32 %v269_v51, 0.0  ;;  %v281_v58 = vmax.f32 %v275_v52, 0.0 }
 0x1db   :  { %v280_v59 = vmax.f32 %v271_v55, 0.0  ;;  %v282_v60 = vmax.f32 %v277_v56, 0.0 }
 0x1dc   :  { %283 = vst [vmem:[#allocation2] sm:$0xff] %v279_v57  ;;  %285 = vst [vmem:[#allocation2 + $0x10] sm:$0xff] %v281_v58 }
 0x1dd   :  { %284 = vst [vmem:[#allocation2 + $0x8] sm:$0xff] %v280_v59  ;;  %286 = vst [vmem:[#allocation2 + $0x18] sm:$0xff] %v282_v60 }
 0x1de   :  { %350 = shalt.err (!%p347_p4)
}
 0x1df   :  { %s351_s8 = scalar_lea.hbm %s530_s4, 512 }
 0x1e0   :  { %p352_p5 = scmp.ne.s32.totalorder %s530_s4, %s351_s8  ;;  %p355_p6 = scmp.lt.u32.totalorder %s351_s8, %s530_s4 }
 0x1e2   :  { %p357_p7 = pnand %p355_p6, %p352_p5 }
 0x1e4   :  { %360 = shalt.err (!%p357_p7)
}
 0x1e5   :  { %s378_s13 = smov 256  }
 0x1e6   :  { %298 = dma.vmem_to_hbm [thread:$0]  %s293_s5, 512, %s530_s4, [#allocation3], %s378_s13, %s378_s13, %s364_s18  }
 0x1e7   :  { %361 = dma.done.wait [#allocation3], 512  }
 0x1e8   :  { %362 = vsyncadd [#allocation3], 4294966784 }
 0x1e9   :  { %302 = vsyncpa [#allocation3], 1 }

</bundles_post_ra>
